<compile_context>
chip_gen: v7x
topology: tpu7x:2x2x1
jax: 0.10.0
libtpu: 0.0.40
codegen_flags: <defaults>
</compile_context>

<pallas_src>
import functools
import math

import jax
import jax.numpy as jnp
from jax.experimental import pallas as pl
from jax.experimental.pallas import tpu as pltpu

_LANE = 512           # lane-dense slab width (multiple of 128)
_MAX_BLOCK_ROWS = 512  # 512 x 512 f32 tile = 1 MiB


def _round_up(a, m):
    return ((a + m - 1) // m) * m


def _lif_seq_kernel(x_ref, mem_init_ref, spk_ref, mem_out_ref, *, beta, threshold):
    """Grid = (row_tiles ['parallel'], T ['arbitrary']).

    mem_out_ref is an accumulator: its output block index is constant along the
    T axis, so it stays resident in VMEM across timesteps and is written back to
    HBM only once per row tile.
    """
    t = pl.program_id(1)

    @pl.when(t == 0)
    def _():
        mem_out_ref[...] = mem_init_ref[...]

    x = x_ref[...]                     # (block_rows, _LANE)
    mem_prev = mem_out_ref[...]
    reset = (mem_prev > threshold).astype(mem_prev.dtype)
    mem_new = beta * mem_prev + x - reset * threshold
    spk_ref[...] = (mem_new > threshold).astype(spk_ref.dtype)
    mem_out_ref[...] = mem_new


def snn_lif_forward_sequence(x_seq, mem0=None, *, beta=0.9, threshold=1.0,
                             spk_dtype=None):
    """Fused multi-timestep LIF.

    x_seq: [T, ...feature dims...] (e.g. [T, N, C, H, W]) float32.
    mem0:  optional initial membrane with the feature shape (zeros if None).
    Returns (spk_seq [T, ...], mem_final [...]).
    """
    t_steps = x_seq.shape[0]
    feat_shape = x_seq.shape[1:]
    total = math.prod(feat_shape)
    dtype = x_seq.dtype
    if spk_dtype is None:
        spk_dtype = dtype              # keep PyTorch semantics (float spikes)
    if mem0 is None:
        mem0 = jnp.zeros(feat_shape, dtype=dtype)

    # Lane-dense layout: pad total element count to (rows x 512), rows a
    # multiple of block_rows (itself a multiple of 8).
    rows_raw = -(-total // _LANE)
    block_rows = min(_MAX_BLOCK_ROWS, _round_up(rows_raw, 8))
    rows = _round_up(rows_raw, block_rows)
    padded = rows * _LANE
    pad = padded - total

    x2 = x_seq.reshape(t_steps, total)
    m1 = mem0.reshape(total)
    if pad:
        x2 = jnp.pad(x2, ((0, 0), (0, pad)))
        m1 = jnp.pad(m1, ((0, pad),))
    x3 = x2.reshape(t_steps, rows, _LANE)
    m2 = m1.reshape(rows, _LANE)

    kernel = functools.partial(_lif_seq_kernel, beta=beta, threshold=threshold)
    num_row_tiles = rows // block_rows

    spk3, mem_out = pl.pallas_call(
        kernel,
        grid=(num_row_tiles, t_steps),
        in_specs=[
            # x[t, r-tile, :] — new tile every grid step.
            pl.BlockSpec((None, block_rows, _LANE), lambda r, t: (t, r, 0)),
            # mem_init[r-tile, :] — fetched once per row tile (constant along t).
            pl.BlockSpec((block_rows, _LANE), lambda r, t: (r, 0)),
        ],
        out_specs=[
            pl.BlockSpec((None, block_rows, _LANE), lambda r, t: (t, r, 0)),
            pl.BlockSpec((block_rows, _LANE), lambda r, t: (r, 0)),
        ],
        out_shape=(
            jax.ShapeDtypeStruct((t_steps, rows, _LANE), spk_dtype),
            jax.ShapeDtypeStruct((rows, _LANE), dtype),
        ),
        input_output_aliases={1: 1},   # mem_prev buffer reused for mem_out
        compiler_params=pltpu.CompilerParams(
            dimension_semantics=("parallel", "arbitrary"),
            vmem_limit_bytes=32 * 1024 * 1024,
        ),
    )(x3, m2)

    spk = spk3.reshape(t_steps, padded)[:, :total].reshape((t_steps,) + feat_shape)
    mem_final = mem_out.reshape(padded)[:total].reshape(feat_shape)
    return spk, mem_final


def snn_lif_forward(x, mem_prev=None, *, beta=0.9, threshold=1.0):
    """Single LIF timestep (the PyTorch module's forward). Returns (spk, mem_new)."""
    spk_seq, mem_new = snn_lif_forward_sequence(
        x[None], mem_prev, beta=beta, threshold=threshold)
    return spk_seq[0], mem_new


if __name__ == "__main__":
    key = jax.random.PRNGKey(0)
    T, N, C, H, W = 4, 2, 4, 16, 16
    x_seq = jax.random.normal(key, (T, N, C, H, W), dtype=jnp.float32) * 1.5

    # Fused multi-timestep path (hidden state stays in VMEM across T).
    spk_seq, mem_final = jax.jit(snn_lif_forward_sequence)(x_seq)
    jax.block_until_ready((spk_seq, mem_final))

    # Pure-JAX reference of the LIF step semantics.
    def ref_step(x, mem_prev, beta=0.9, threshold=1.0):
        reset = (mem_prev > threshold).astype(x.dtype)
        mem_new = beta * mem_prev + x - reset * threshold
        spk = (mem_new > threshold).astype(x.dtype)
        return spk, mem_new

    mem_r = jnp.zeros((N, C, H, W), jnp.float32)
    spk_r_list = []
    for t in range(T):
        s_r, mem_r = ref_step(x_seq[t], mem_r)
        spk_r_list.append(s_r)
    spk_r = jnp.stack(spk_r_list)

    assert jnp.allclose(spk_seq, spk_r)
    assert jnp.allclose(mem_final, mem_r, atol=1e-5)

    # Single-step path (one pallas_call per module forward, state carried by caller).
    spk0, mem0 = snn_lif_forward(x_seq[0], None, beta=0.9, threshold=1.0)
    spk1, mem1 = snn_lif_forward(x_seq[1], mem0, beta=0.9, threshold=1.0)
    r_spk0, r_mem0 = ref_step(x_seq[0], jnp.zeros_like(x_seq[0]))
    r_spk1, r_mem1 = ref_step(x_seq[1], r_mem0)
    jax.block_until_ready((spk0, mem0, spk1, mem1))
    assert jnp.allclose(spk0, r_spk0) and jnp.allclose(mem0, r_mem0, atol=1e-6)
    assert jnp.allclose(spk1, r_spk1) and jnp.allclose(mem1, r_mem1, atol=1e-6)

    print("KERNEL_OK")
</pallas_src>

<mosaic_0001>
module attributes {stable_mosaic.version = 11 : i64} {
  func.func @_lif_seq_kernel(%arg0: i32, %arg1: i32, %arg2: memref<1x8x512xf32, #tpu.memory_space<vmem>>, %arg3: memref<8x512xf32, #tpu.memory_space<vmem>>, %arg4: memref<1x8x512xf32, #tpu.memory_space<vmem>>, %arg5: memref<8x512xf32, #tpu.memory_space<vmem>>) attributes {dimension_semantics = [#tpu.dimension_semantics<parallel>, #tpu.dimension_semantics<arbitrary>], iteration_bounds = array<i64: 1, 4>, scalar_prefetch = 0 : i64, scratch_operands = 0 : i64, tpu.core_type = #tpu.core_type<tc>, window_params = [{transform_indices = @transform_0, window_bounds = array<i64: 1, 8, 512>}, {transform_indices = @transform_1, window_bounds = array<i64: 8, 512>}, {transform_indices = @transform_2, window_bounds = array<i64: 1, 8, 512>}, {transform_indices = @transform_3, window_bounds = array<i64: 8, 512>}]} {
    %c0_i32 = arith.constant 0 : i32
    %0 = arith.cmpi eq, %arg1, %c0_i32 : i32
    %1 = arith.extui %0 : i1 to i32
    %c0_i32_0 = arith.constant 0 : i32
    %2 = arith.cmpi ne, %1, %c0_i32_0 : i32
    scf.if %2 {
      %c0_13 = arith.constant 0 : index
      %c0_14 = arith.constant 0 : index
      %24 = vector.load %arg3[%c0_13, %c0_14] : memref<8x512xf32, #tpu.memory_space<vmem>>, vector<8x512xf32>
      %c0_15 = arith.constant 0 : index
      %c0_16 = arith.constant 0 : index
      %25 = vector.load %arg5[%c0_15, %c0_16] : memref<8x512xf32, #tpu.memory_space<vmem>>, vector<8x512xf32>
      tpu.vector_store %arg5[%c0_15, %c0_16], %24 {strides = array<i32>} : memref<8x512xf32, #tpu.memory_space<vmem>>, vector<8x512xf32>,
    } else {
    }
    %c0 = arith.constant 0 : index
    %c0_1 = arith.constant 0 : index
    %c0_2 = arith.constant 0 : index
    %3 = vector.load %arg2[%c0, %c0_1, %c0_2] : memref<1x8x512xf32, #tpu.memory_space<vmem>>, vector<1x8x512xf32>
    %4 = vector.shape_cast %3 : vector<1x8x512xf32> to vector<8x512xf32>
    %c0_3 = arith.constant 0 : index
    %c0_4 = arith.constant 0 : index
    %5 = vector.load %arg5[%c0_3, %c0_4] : memref<8x512xf32, #tpu.memory_space<vmem>>, vector<8x512xf32>
    %cst = arith.constant 1.000000e+00 : f32
    %6 = vector.broadcast %cst : f32 to vector<8x512xf32>
    %7 = arith.cmpf ogt, %5, %6 : vector<8x512xf32>
    %8 = arith.extui %7 : vector<8x512xi1> to vector<8x512xi32>
    %9 = arith.sitofp %8 : vector<8x512xi32> to vector<8x512xf32>
    %cst_5 = arith.constant 0.899999976 : f32
    %10 = vector.broadcast %cst_5 : f32 to vector<8x512xf32>
    %11 = arith.mulf %10, %5 : vector<8x512xf32>
    %12 = arith.addf %11, %4 : vector<8x512xf32>
    %cst_6 = arith.constant 1.000000e+00 : f32
    %13 = vector.broadcast %cst_6 : f32 to vector<8x512xf32>
    %14 = arith.mulf %9, %13 : vector<8x512xf32>
    %15 = arith.subf %12, %14 : vector<8x512xf32>
    %cst_7 = arith.constant 1.000000e+00 : f32
    %16 = vector.broadcast %cst_7 : f32 to vector<8x512xf32>
    %17 = arith.cmpf ogt, %15, %16 : vector<8x512xf32>
    %18 = arith.extui %17 : vector<8x512xi1> to vector<8x512xi32>
    %19 = arith.sitofp %18 : vector<8x512xi32> to vector<8x512xf32>
    %c0_8 = arith.constant 0 : index
    %c0_9 = arith.constant 0 : index
    %c0_10 = arith.constant 0 : index
    %20 = vector.load %arg4[%c0_8, %c0_9, %c0_10] : memref<1x8x512xf32, #tpu.memory_space<vmem>>, vector<1x8x512xf32>
    %21 = vector.shape_cast %20 : vector<1x8x512xf32> to vector<8x512xf32>
    %22 = vector.shape_cast %19 : vector<8x512xf32> to vector<1x8x512xf32>
    tpu.vector_store %arg4[%c0_8, %c0_9, %c0_10], %22 {strides = array<i32>} : memref<1x8x512xf32, #tpu.memory_space<vmem>>, vector<1x8x512xf32>,
    %c0_11 = arith.constant 0 : index
    %c0_12 = arith.constant 0 : index
    %23 = vector.load %arg5[%c0_11, %c0_12] : memref<8x512xf32, #tpu.memory_space<vmem>>, vector<8x512xf32>
    tpu.vector_store %arg5[%c0_11, %c0_12], %15 {strides = array<i32>} : memref<8x512xf32, #tpu.memory_space<vmem>>, vector<8x512xf32>,
    return
  }
  func.func @transform_0(%arg0: i32, %arg1: i32) -> (i32, i32, i32) {
    %c0_i32 = arith.constant 0 : i32
    %c0_i32_0 = arith.constant 0 : i32
    return %arg1, %arg0, %c0_i32 : i32, i32, i32
  }
  func.func @transform_1(%arg0: i32, %arg1: i32) -> (i32, i32) {
    %c0_i32 = arith.constant 0 : i32
    %c0_i32_0 = arith.constant 0 : i32
    return %arg0, %c0_i32 : i32, i32
  }
  func.func @transform_2(%arg0: i32, %arg1: i32) -> (i32, i32, i32) {
    %c0_i32 = arith.constant 0 : i32
    %c0_i32_0 = arith.constant 0 : i32
    return %arg1, %arg0, %c0_i32 : i32, i32, i32
  }
  func.func @transform_3(%arg0: i32, %arg1: i32) -> (i32, i32) {
    %c0_i32 = arith.constant 0 : i32
    %c0_i32_0 = arith.constant 0 : i32
    return %arg0, %c0_i32 : i32, i32
  }
}

</mosaic_0001>

<bundles_post_ra>
// kernel: snn_lif_forward_sequence.1
= control target key start
LH: loop header
LB: loop body
LE: loop exit
PB: predicated region body
PF: predicated region fallthrough
CT: control target
= control target key end

     0   :  { %s536_s12 = smov 0   ;;  %s538_s13 = smov 0   ;;  %s623_s0 = inlined_call_operand.vmem [shape: f32[4,8,512], index: 0, kind: input, shape index: {}]   ;;  %s624_s1 = inlined_call_operand.vmem [shape: f32[8,512], index: 1, kind: input, shape index: {}, may-alias: {1,3}]   ;;  %s625_s2 = inlined_call_operand.vmem [shape: f32[4,8,512], index: 2, kind: output, shape index: {0}]   ;;  %s626_s3 = inlined_call_operand.vmem [shape: f32[8,512], index: 3, kind: output, shape index: {1}, may-alias: {1,3}]  }
   0x1   :  { %s540_s14 = smov 0  }
   0x2 LB: > { %s23_s15 = sadd.s32 1, %s509_s13  ;;  %p447_p0 = scmp.ge.s32.totalorder %s513_s14, 1  ;;  %s513_s14 = sphi %s540_s14, %s14_s14   ;;  %s509_s13 = sphi %s538_s13, %s628_s13   ;;  %s505_s12 = sphi %s536_s12, %s627_s12  }
   0x3   : > { %p24_p1 = scmp.ge.s32.totalorder %s23_s15, 4  ;;  %p170_p2 = scmp.lt.s32.totalorder %s513_s14, 5 }
   0x5   : > { %s630_s15 = smov (%p24_p1, %s23_s15), 0  ;;  %p171_p3 = pnand %p447_p0, %p170_p2 }
   0x6   : > { %p212_p4 = scmp.lt.s32.totalorder (!%p171_p3), %s505_s12, 3  ;;  %p452_p5 = scmp.ne.s32.totalorder (!%p171_p3), %s505_s12, 0 }
   0x7   : > { %174 = sbr.rel (%p171_p3) target bundleno = 42 (0x2a), region = 28 }
   0xe   : > { %s213_s16 = scalar_select %p212_p4, %s505_s12, 3 }
   0xf   : > { %243 = sbr.rel (%p452_p5) target bundleno = 26 (0x1a), region = 32  ;;  %v244_v0 = vld [vmem:[%s624_s1] sm:$0xff] (!%p452_p5)  ;;  %v245_v1 = vld [vmem:[%s624_s1 + $0x8] sm:$0xff] (!%p452_p5)  ;;  %v246_v2 = vld [vmem:[%s624_s1 + $0x10] sm:$0xff] (!%p452_p5) }
  0x10   : > { %s464_s17 = sshll.u32 %s213_s16, 5  ;;  %248 = vst [vmem:[%s626_s3] sm:$0xff] (!%p452_p5), %v244_v0  ;;  %249 = vst [vmem:[%s626_s3 + $0x8] sm:$0xff] (!%p452_p5), %v245_v1 }
  0x11   : > { %s220_s20 = scalar_lea.vmem %s623_s0, %s464_s17  ;;  %s560_s23 = scalar_lea.vmem %s625_s2, %s464_s17  ;;  %250 = vst [vmem:[%s626_s3 + $0x10] sm:$0xff] (!%p452_p5), %v246_v2 }
  0x18   : > { %v247_v3 = vld [vmem:[%s624_s1 + $0x18] sm:$0xff] }
  0x19   : > { %251 = vst [vmem:[%s626_s3 + $0x18] sm:$0xff] %v247_v3 }
  0x1a PF: > { %v252_v4 = vld [vmem:[%s220_s20] sm:$0xff]  ;;  %v253_v7 = vld [vmem:[%s220_s20 + $0x8] sm:$0xff]  ;;  %v515_v10 = vmov 0.0   ;;  %v254_v13 = vld [vmem:[%s220_s20 + $0x10] sm:$0xff] }
  0x1b   : > { %v256_v5 = vld [vmem:[%s626_s3] sm:$0xff]  ;;  %v257_v8 = vld [vmem:[%s626_s3 + $0x8] sm:$0xff]  ;;  %v255_v17 = vld [vmem:[%s220_s20 + $0x18] sm:$0xff] }
  0x1c   : > { %vm260_vm0 = vcmp.gt.f32.partialorder %v256_v5, 1.0  ;;  %v272_v6 = vmul.f32 0.9, %v256_v5  ;;  %v258_v9 = vld [vmem:[%s626_s3 + $0x10] sm:$0xff]  ;;  %vm261_vm1 = vcmp.gt.f32.partialorder %v257_v8, 1.0 }
  0x1d   : > { %v453_v11 = vsel %vm260_vm0, 1.0, %v515_v10  ;;  %v273_v12 = vmul.f32 0.9, %v257_v8  ;;  %vm262_vm2 = vcmp.gt.f32.partialorder %v258_v9, 1.0  ;;  %v454_v15 = vsel %vm261_vm1, 1.0, %v515_v10 }
  0x1e   : > { %v276_v14 = vadd.f32 %v272_v6, %v252_v4  ;;  %v274_v16 = vmul.f32 0.9, %v258_v9  ;;  %v455_v20 = vsel %vm262_vm2, 1.0, %v515_v10 }
  0x1f   : > { %v277_v19 = vadd.f32 %v273_v12, %v253_v7 }
  0x20   : > { %v259_v18 = vld [vmem:[%s626_s3 + $0x18] sm:$0xff]  ;;  %v280_v22 = vsub.f32 %v276_v14, %v453_v11  ;;  %v278_v23 = vadd.f32 %v274_v16, %v254_v13 }
  0x21   : > { %vm263_vm3 = vcmp.gt.f32.partialorder %v259_v18, 1.0  ;;  %v275_v21 = vmul.f32 0.9, %v259_v18  ;;  %v281_v25 = vsub.f32 %v277_v19, %v454_v15 }
  0x22   : > { %v456_v24 = vsel %vm263_vm3, 1.0, %v515_v10  ;;  %vm284_vm4 = vcmp.gt.f32.partialorder %v280_v22, 1.0  ;;  %300 = vst [vmem:[%s626_s3] sm:$0xff] %v280_v22  ;;  %v282_v27 = vsub.f32 %v278_v23, %v455_v20 }
  0x23   : > { %v279_v26 = vadd.f32 %v275_v21, %v255_v17  ;;  %v457_v28 = vsel %vm284_vm4, 1.0, %v515_v10  ;;  %vm285_vm5 = vcmp.gt.f32.partialorder %v281_v25, 1.0  ;;  %301 = vst [vmem:[%s626_s3 + $0x8] sm:$0xff] %v281_v25 }
  0x24   : > { %296 = vst [vmem:[%s560_s23] sm:$0xff] %v457_v28  ;;  %v458_v30 = vsel %vm285_vm5, 1.0, %v515_v10  ;;  %vm286_vm6 = vcmp.gt.f32.partialorder %v282_v27, 1.0  ;;  %302 = vst [vmem:[%s626_s3 + $0x10] sm:$0xff] %v282_v27 }
  0x25   : > { %v283_v29 = vsub.f32 %v279_v26, %v456_v24  ;;  %297 = vst [vmem:[%s560_s23 + $0x8] sm:$0xff] %v458_v30  ;;  %v459_v31 = vsel %vm286_vm6, 1.0, %v515_v10 }
  0x26   : > { %298 = vst [vmem:[%s560_s23 + $0x10] sm:$0xff] %v459_v31 }
  0x27   : > { %vm287_vm7 = vcmp.gt.f32.partialorder %v283_v29, 1.0  ;;  %303 = vst [vmem:[%s626_s3 + $0x18] sm:$0xff] %v283_v29 }
  0x28   : > { %v460_v32 = vsel %vm287_vm7, 1.0, %v515_v10 }
  0x29   : > { %299 = vst [vmem:[%s560_s23 + $0x18] sm:$0xff] %v460_v32 }
  0x2a PF: > { %s14_s14 = sadd.s32 1, %s513_s14   ;;  %s627_s12 = smov %s509_s13 }
  0x2b   : > { %p11_p6 = scmp.ge.s32.totalorder %s14_s14, 6   ;;  %s628_s13 = smov %s630_s15 }
  0x2d   :  { %13 = sbr.rel (!%p11_p6) target bundleno = 2 (0x2), region = 77 }

</bundles_post_ra>
